<compile_context>
chip_gen: v7x
topology: tpu7x:2x2x1
jax: 0.10.0
libtpu: 0.0.40
codegen_flags: <defaults>
</compile_context>

<pallas_src>
import functools

import jax
import jax.numpy as jnp
from jax.experimental import pallas as pl
from jax.experimental.pallas import tpu as pltpu


# ----------------------------- Pallas kernels -------------------------------


def _conv_im2col_kernel(x_ref, w_ref, y_ref, s_ref, ss_ref):
    """One (batch, spatial-tile) step of the 3x3/s2 conv as a single MXU matmul.

    x_ref : (K, TP)    bf16  im2col patches (K = 9*Cin), spatial tile on lanes
    w_ref : (Cout, K)  bf16  folded weights (resident across the grid)
    y_ref : (Cout, TP) bf16  conv output tile (already NCHW layout, lane-dense)
    s_ref : (Cout, 1)  f32   per-tile channel sums        (BatchNorm stats)
    ss_ref: (Cout, 1)  f32   per-tile channel sum-of-sq   (BatchNorm stats)
    """
    acc = jnp.dot(w_ref[...], x_ref[...], preferred_element_type=jnp.float32)
    y_ref[...] = acc.astype(y_ref.dtype)
    # Stats come from the f32 accumulator (not the bf16 store).  With no conv
    # bias, zero-padded spatial columns give acc == 0 and contribute nothing.
    s_ref[...] = jnp.sum(acc, axis=1, keepdims=True)
    ss_ref[...] = jnp.sum(acc * acc, axis=1, keepdims=True)


def _bn_lrelu_kernel(y_ref, scale_ref, shift_ref, o_ref, *, slope):
    """Apply precomputed per-channel scale/shift then LeakyReLU on one tile."""
    z = y_ref[...].astype(jnp.float32) * scale_ref[...] + shift_ref[...]
    o_ref[...] = jnp.where(z >= 0, z, slope * z)


# ------------------------------ wrapper --------------------------------------


def _spatial_tiling(p, max_tile):
    """Pad P up to a multiple of 128 and pick a lane tile that divides it."""
    p_pad = ((p + 127) // 128) * 128
    tp = min(max_tile, p_pad)
    tp -= tp % 128
    while p_pad % tp != 0:          # terminates: 128 always divides p_pad
        tp -= 128
    return tp, p_pad


def _vmem_budget():
    """(max spatial tile, vmem_limit_bytes) tuned per TPU generation."""
    try:
        kind = jax.devices()[0].device_kind.lower()
    except Exception:  # pragma: no cover - be conservative if query fails
        kind = ""
    big_vmem = ("v5" in kind) or ("v6" in kind)      # 128 MiB VMEM per core
    if big_vmem:
        return 2048, 64 * 1024 * 1024
    # Safe on v7x (64 MiB VMEM / TensorCore) and unknown future chips.
    return 1024, 40 * 1024 * 1024


def d_block_forward(x_nchw, w_oihw, bias, gamma, beta, *, stride=2,
                    eps=1e-5, slope=0.01):
    assert stride == 2, "kernel specialized for the module default stride=2"
    n, cin, h, w = x_nchw.shape
    cout = w_oihw.shape[0]
    ho = (h - 1) // 2 + 1
    wo = (w - 1) // 2 + 1
    p = ho * wo
    k = 9 * cin

    # The conv bias is exactly cancelled by train-mode BatchNorm (mean absorbs
    # it, variance is shift-invariant), so we simply do not apply it.
    del bias

    max_tile, vmem_limit = _vmem_budget()
    tp, p_pad = _spatial_tiling(p, max_tile)
    gp = p_pad // tp
    grid = (n, gp)

    # glue: bf16 im2col built directly in bf16 (cast BEFORE pad/slice/stack),
    # lane-dense layout (N, 9*Cin, P_pad) with the spatial dim on lanes.
    xb = x_nchw.astype(jnp.bfloat16)
    xp = jnp.pad(xb, ((0, 0), (0, 0), (1, 1), (1, 1)))
    taps = [xp[:, :, kh:kh + 2 * ho:2, kw:kw + 2 * wo:2]     # (N, Cin, Ho, Wo)
            for kh in range(3) for kw in range(3)]
    patches = jnp.stack(taps, axis=1).reshape(n, k, p)
    if p_pad != p:
        patches = jnp.pad(patches, ((0, 0), (0, 0), (0, p_pad - p)))

    # weights folded to (Cout, 9*Cin) with matching (kh, kw, cin) ordering.
    w_fold = jnp.transpose(w_oihw, (0, 2, 3, 1)).reshape(cout, k)
    w_fold = w_fold.astype(jnp.bfloat16)

    cparams = pltpu.CompilerParams(
        dimension_semantics=("parallel", "parallel"),
        vmem_limit_bytes=vmem_limit,
    )

    # --- conv (single matmul per tile) + fused per-tile BN statistics ---
    # For very large Cin*Cout layers, K / Cout could be tiled with an extra
    # "arbitrary" grid axis + VMEM accumulator; not needed at these sizes.
    y, sums, sumsqs = pl.pallas_call(
        _conv_im2col_kernel,
        grid=grid,
        in_specs=[
            pl.BlockSpec((None, k, tp), lambda i, j: (i, 0, j)),
            pl.BlockSpec((cout, k), lambda i, j: (0, 0)),
        ],
        out_specs=[
            pl.BlockSpec((None, cout, tp), lambda i, j: (i, 0, j)),
            pl.BlockSpec((None, None, cout, 1), lambda i, j: (i, j, 0, 0)),
            pl.BlockSpec((None, None, cout, 1), lambda i, j: (i, j, 0, 0)),
        ],
        out_shape=(
            jax.ShapeDtypeStruct((n, cout, p_pad), jnp.bfloat16),
            jax.ShapeDtypeStruct((n, gp, cout, 1), jnp.float32),
            jax.ShapeDtypeStruct((n, gp, cout, 1), jnp.float32),
        ),
        compiler_params=cparams,
    )(patches, w_fold)

    # glue: tiny f32 reduction of per-tile stats -> per-channel scale / shift.
    # Padded spatial columns contribute exactly 0 (no bias), so divide by the
    # TRUE element count n*p.  Biased variance, matching PyTorch train mode.
    cnt = float(n * p)
    mean = jnp.sum(sums, axis=(0, 1, 3)) / cnt
    var = jnp.maximum(jnp.sum(sumsqs, axis=(0, 1, 3)) / cnt - mean * mean, 0.0)
    scale_v = gamma.astype(jnp.float32) * jax.lax.rsqrt(var + eps)
    shift_v = beta.astype(jnp.float32) - mean * scale_v
    scale = scale_v.reshape(cout, 1)
    shift = shift_v.reshape(cout, 1)

    # --- tiled normalize + LeakyReLU (reads bf16 y, writes f32 output) ---
    out_flat = pl.pallas_call(
        functools.partial(_bn_lrelu_kernel, slope=slope),
        grid=grid,
        in_specs=[
            pl.BlockSpec((None, cout, tp), lambda i, j: (i, 0, j)),
            pl.BlockSpec((cout, 1), lambda i, j: (0, 0)),
            pl.BlockSpec((cout, 1), lambda i, j: (0, 0)),
        ],
        out_specs=pl.BlockSpec((None, cout, tp), lambda i, j: (i, 0, j)),
        out_shape=jax.ShapeDtypeStruct((n, cout, p_pad), jnp.float32),
        compiler_params=cparams,
    )(y, scale, shift)

    # already NCHW-ordered: drop spatial padding, fold P back to (Ho, Wo).
    if p_pad != p:
        out_flat = out_flat[:, :, :p]
    return out_flat.reshape(n, cout, ho, wo)


# --------------------------- pure-JAX reference -------------------------------


def d_block_reference(x, w, bias, gamma, beta, *, stride=2, eps=1e-5, slope=0.01):
    y = jax.lax.conv_general_dilated(
        x, w, window_strides=(stride, stride), padding=((1, 1), (1, 1)),
        dimension_numbers=("NCHW", "OIHW", "NCHW"))
    y = y + bias.reshape(1, -1, 1, 1)
    mean = jnp.mean(y, axis=(0, 2, 3), keepdims=True)
    var = jnp.mean((y - mean) ** 2, axis=(0, 2, 3), keepdims=True)
    z = (y - mean) * jax.lax.rsqrt(var + eps) * gamma.reshape(1, -1, 1, 1) \
        + beta.reshape(1, -1, 1, 1)
    return jnp.where(z >= 0, z, slope * z)


# ---------------------------------- main --------------------------------------


if __name__ == "__main__":
    N, CIN, H, W, COUT = 2, 4, 16, 16, 8

    key = jax.random.PRNGKey(0)
    kx, kw, kb = jax.random.split(key, 3)

    x = jax.random.normal(kx, (N, CIN, H, W), jnp.float32)

    # deterministic init mimicking PyTorch Conv2d defaults (uniform ±1/sqrt(fan_in))
    fan_in = CIN * 3 * 3
    bound = 1.0 / (fan_in ** 0.5)
    conv_w = jax.random.uniform(kw, (COUT, CIN, 3, 3), jnp.float32, -bound, bound)
    conv_b = jax.random.uniform(kb, (COUT,), jnp.float32, -bound, bound)
    # BatchNorm2d affine init: gamma=1, beta=0
    bn_gamma = jnp.ones((COUT,), jnp.float32)
    bn_beta = jnp.zeros((COUT,), jnp.float32)

    out = jax.block_until_ready(
        d_block_forward(x, conv_w, conv_b, bn_gamma, bn_beta))
    ref = d_block_reference(x, conv_w, conv_b, bn_gamma, bn_beta)

    assert out.shape == (N, COUT, H // 2, W // 2), out.shape
    max_err = float(jnp.max(jnp.abs(out - ref)))
    if not bool(jnp.allclose(out, ref, atol=5e-2, rtol=5e-2)):
        raise AssertionError(f"Pallas output mismatch, max abs err = {max_err}")

    print("KERNEL_OK")
</pallas_src>

<mosaic_0001>
module attributes {stable_mosaic.version = 11 : i64} {
  func.func @_conv_im2col_kernel(%arg0: i32, %arg1: i32, %arg2: memref<1x36x128xbf16, #tpu.memory_space<vmem>>, %arg3: memref<8x36xbf16, #tpu.memory_space<vmem>>, %arg4: memref<1x8x128xbf16, #tpu.memory_space<vmem>>, %arg5: memref<1x1x8x1xf32, #tpu.memory_space<vmem>>, %arg6: memref<1x1x8x1xf32, #tpu.memory_space<vmem>>) attributes {dimension_semantics = [#tpu.dimension_semantics<parallel>, #tpu.dimension_semantics<parallel>], iteration_bounds = array<i64: 2, 1>, scalar_prefetch = 0 : i64, scratch_operands = 0 : i64, tpu.core_type = #tpu.core_type<tc>, window_params = [{transform_indices = @transform_0, window_bounds = array<i64: 1, 36, 128>}, {pipeline_mode = #tpu.pipeline_mode<synchronous>, transform_indices = @transform_1, window_bounds = array<i64: 8, 36>}, {transform_indices = @transform_2, window_bounds = array<i64: 1, 8, 128>}, {transform_indices = @transform_3, window_bounds = array<i64: 1, 1, 8, 1>}, {transform_indices = @transform_4, window_bounds = array<i64: 1, 1, 8, 1>}]} {
    %c0 = arith.constant 0 : index
    %c0_0 = arith.constant 0 : index
    %0 = vector.load %arg3[%c0, %c0_0] : memref<8x36xbf16, #tpu.memory_space<vmem>>, vector<8x36xbf16>
    %c0_1 = arith.constant 0 : index
    %c0_2 = arith.constant 0 : index
    %c0_3 = arith.constant 0 : index
    %1 = vector.load %arg2[%c0_1, %c0_2, %c0_3] : memref<1x36x128xbf16, #tpu.memory_space<vmem>>, vector<1x36x128xbf16>
    %2 = vector.shape_cast %1 : vector<1x36x128xbf16> to vector<36x128xbf16>
    %cst = arith.constant dense<0.000000e+00> : vector<8x128xf32>
    %3 = tpu.matmul %0, %2, %cst {dimension_numbers = #tpu.dot_dimension_numbers<[1], [0], [0], [1], [0, 0, 1, 1], [], []>} : vector<8x36xbf16>, vector<36x128xbf16>, vector<8x128xf32> -> vector<8x128xf32>
    %4 = arith.truncf %3 : vector<8x128xf32> to vector<8x128xbf16>
    %c0_4 = arith.constant 0 : index
    %c0_5 = arith.constant 0 : index
    %c0_6 = arith.constant 0 : index
    %5 = vector.load %arg4[%c0_4, %c0_5, %c0_6] : memref<1x8x128xbf16, #tpu.memory_space<vmem>>, vector<1x8x128xbf16>
    %6 = vector.shape_cast %5 : vector<1x8x128xbf16> to vector<8x128xbf16>
    %7 = vector.shape_cast %4 : vector<8x128xbf16> to vector<1x8x128xbf16>
    tpu.vector_store %arg4[%c0_4, %c0_5, %c0_6], %7 {strides = array<i32>} : memref<1x8x128xbf16, #tpu.memory_space<vmem>>, vector<1x8x128xbf16>,
    %cst_7 = arith.constant dense<0.000000e+00> : vector<8xf32>
    %8 = vector.multi_reduction <add>, %3, %cst_7 [1] : vector<8x128xf32> to vector<8xf32>
    %9 = vector.shape_cast %8 : vector<8xf32> to vector<8x1xf32>
    %c0_8 = arith.constant 0 : index
    %c0_9 = arith.constant 0 : index
    %c0_10 = arith.constant 0 : index
    %c0_11 = arith.constant 0 : index
    %10 = vector.load %arg5[%c0_8, %c0_9, %c0_10, %c0_11] : memref<1x1x8x1xf32, #tpu.memory_space<vmem>>, vector<1x1x8x1xf32>
    %11 = vector.shape_cast %10 : vector<1x1x8x1xf32> to vector<8x1xf32>
    %12 = vector.shape_cast %9 : vector<8x1xf32> to vector<1x1x8x1xf32>
    tpu.vector_store %arg5[%c0_8, %c0_9, %c0_10, %c0_11], %12 {strides = array<i32>} : memref<1x1x8x1xf32, #tpu.memory_space<vmem>>, vector<1x1x8x1xf32>,
    %13 = arith.mulf %3, %3 : vector<8x128xf32>
    %cst_12 = arith.constant dense<0.000000e+00> : vector<8xf32>
    %14 = vector.multi_reduction <add>, %13, %cst_12 [1] : vector<8x128xf32> to vector<8xf32>
    %15 = vector.shape_cast %14 : vector<8xf32> to vector<8x1xf32>
    %c0_13 = arith.constant 0 : index
    %c0_14 = arith.constant 0 : index
    %c0_15 = arith.constant 0 : index
    %c0_16 = arith.constant 0 : index
    %16 = vector.load %arg6[%c0_13, %c0_14, %c0_15, %c0_16] : memref<1x1x8x1xf32, #tpu.memory_space<vmem>>, vector<1x1x8x1xf32>
    %17 = vector.shape_cast %16 : vector<1x1x8x1xf32> to vector<8x1xf32>
    %18 = vector.shape_cast %15 : vector<8x1xf32> to vector<1x1x8x1xf32>
    tpu.vector_store %arg6[%c0_13, %c0_14, %c0_15, %c0_16], %18 {strides = array<i32>} : memref<1x1x8x1xf32, #tpu.memory_space<vmem>>, vector<1x1x8x1xf32>,
    return
  }
  func.func @transform_0(%arg0: i32, %arg1: i32) -> (i32, i32, i32) {
    %c0_i32 = arith.constant 0 : i32
    %c0_i32_0 = arith.constant 0 : i32
    return %arg0, %c0_i32, %arg1 : i32, i32, i32
  }
  func.func @transform_1(%arg0: i32, %arg1: i32) -> (i32, i32) {
    %c0_i32 = arith.constant 0 : i32
    %c0_i32_0 = arith.constant 0 : i32
    %c0_i32_1 = arith.constant 0 : i32
    return %c0_i32, %c0_i32_0 : i32, i32
  }
  func.func @transform_2(%arg0: i32, %arg1: i32) -> (i32, i32, i32) {
    %c0_i32 = arith.constant 0 : i32
    %c0_i32_0 = arith.constant 0 : i32
    return %arg0, %c0_i32, %arg1 : i32, i32, i32
  }
  func.func @transform_3(%arg0: i32, %arg1: i32) -> (i32, i32, i32, i32) {
    %c0_i32 = arith.constant 0 : i32
    %c0_i32_0 = arith.constant 0 : i32
    %c0_i32_1 = arith.constant 0 : i32
    return %arg0, %arg1, %c0_i32, %c0_i32_0 : i32, i32, i32, i32
  }
  func.func @transform_4(%arg0: i32, %arg1: i32) -> (i32, i32, i32, i32) {
    %c0_i32 = arith.constant 0 : i32
    %c0_i32_0 = arith.constant 0 : i32
    %c0_i32_1 = arith.constant 0 : i32
    return %arg0, %arg1, %c0_i32, %c0_i32_0 : i32, i32, i32, i32
  }
}

</mosaic_0001>

<bundles_post_ra>
// kernel: tpu_custom_call.1
= control target key start
LH: loop header
LB: loop body
LE: loop exit
PB: predicated region body
PF: predicated region fallthrough
CT: control target
= control target key end

     0   :  { %10 = vsyncpa [#allocation3], 0  ;;  %s828_s0 = inlined_call_operand.vmem [shape: bf16[2,36,128], index: 0, kind: input, shape index: {}]   ;;  %s829_s1 = inlined_call_operand.vmem [shape: bf16[8,36], index: 1, kind: input, shape index: {}]   ;;  %s830_s2 = inlined_call_operand.hbm [shape: bf16[2,8,128], index: 2, kind: output, shape index: {0}]   ;;  %s831_s3 = inlined_call_operand.vmem [shape: f32[2,1,8,1], index: 3, kind: output, shape index: {1}]   ;;  %s832_s4 = inlined_call_operand.vmem [shape: f32[2,1,8,1], index: 4, kind: output, shape index: {2}]  }
   0x1   :  { %12 = vsyncpa [#allocation3 + $0x1], 0  ;;  %s709_s15 = smov 0   ;;  %s711_s16 = smov 0  }
   0x2   :  { %s713_s17 = smov 0   ;;  %s715_s18 = smov 0  }
   0x3   :  { %s717_s19 = smov 0   ;;  %s719_s20 = smov 0  }
   0x4 LB: > { %s509_s21 = sadd.s32 4294967295, %s679_s20   ;;  %s510_s22 = sadd.s32 4294967294, %s679_s20   ;;  %s679_s20 = sphi %s719_s20, %s18_s20   ;;  %s675_s19 = sphi %s717_s19, %s839_s19   ;;  %s671_s18 = sphi %s715_s18, %s838_s18   ;;  %s667_s17 = sphi %s713_s17, %s837_s17   ;;  %s663_s16 = sphi %s711_s16, %s836_s16   ;;  %s659_s15 = sphi %s709_s15, %s835_s15  }
   0x5   : > { %s30_s23 = sadd.s32 1, %s675_s19  ;;  %s88_s24 = sadd.s32 1, %s667_s17 }
   0x6   : > { %p32_p0 = scmp.ge.s32.totalorder %s30_s23, 2  ;;  %p98_p1 = scmp.ne.s32.totalorder %s667_s17, %s663_s16 }
   0x7   : > { %p99_p2 = scmp.eq.s32.totalorder %s509_s21, 1  ;;  %p104_p3 = scmp.ne.s32.totalorder %s663_s16, %s659_s15 }
   0x8   : > { %s841_s23 = smov (%p32_p0, %s30_s23), 0  ;;  %p105_p5 = scmp.eq.s32.totalorder %s510_s22, 1 }
   0x9   : > { %p749_p4 = por %p99_p2, %p98_p1  ;;  %s83_s26 = ssub.s32 %s675_s19, %s841_s23 }
   0xa   : > { %p513_p6 = scmp.ge.s32.totalorder %s679_s20, 1  ;;  %p86_p7 = scmp.eq.s32.totalorder %s83_s26, 0 }
   0xb   : > { %p756_p8 = por %p105_p5, %p104_p3  ;;  %p193_p9 = scmp.lt.s32.totalorder %s679_s20, 3 }
   0xc   : > { %s762_s28 = scalar_select %p86_p7, %s667_s17, %s88_s24  }
   0xd   : > { %p194_p10 = pnand %p513_p6, %p193_p9 }
   0xe   : > { %p236_p11 = scmp.lt.s32.totalorder (!%p194_p10), %s671_s18, 1  ;;  %v681_v0 = vmov (!%p194_p10), 0.0   ;;  %vm682_vm0 = vmmov (!%p194_p10), 0   ;;  %vm284_vm1 = vcmask (!%p194_p10), 1041408   ;;  %v259_v5 = vld [vmem:[%s829_s1] sm:$0xf] (!%p194_p10) }
   0xf   : > { %197 = sbr.rel (%p194_p10) target bundleno = 398 (0x18e), region = 28  ;;  %530 = vmatprep.subr.bf16.mxu0 (!%p194_p10), %v681_v0  ;;  %536 = vmatprep.mubr.msk.bf16.mxu0 (!%p194_p10), %vm682_vm0, %v681_v0  ;;  %vm280_vm2 = vcmask (!%p194_p10), 293888   ;;  %s215_s10 = sand.u32 (!%p194_p10), 1, %s663_s16  }
  0x10   : > { %s514_s11 = sshll.u32 (!%p194_p10), %s215_s10, 2  ;;  %s523_s13 = sshll.u32 (!%p194_p10), %s671_s18, 6 }
  0x11   : > { %s217_s12 = scalar_lea.vmem (!%p194_p10), [#allocation2], %s514_s11  ;;  %s780_s24 = scalar_lea.hbm (!%p194_p10), %s830_s2, %s523_s13 }
  0x12   : > { %s367_s14 = sshll.u32 (!%p194_p10), %s217_s12, 4  ;;  %s339_s26 = scalar_lea.sflag (!%p194_p10), [#allocation3], %s215_s10  ;;  %s368_s14 = int_to_ptr.vmem [resolvable:$true] %s367_s14 }
  0x13   : > { %s683_s5 = smov (!%p194_p10), [#allocation2]  }
  0x14   : > { %s605_s6 = sshll.u32 (!%p194_p10), %s683_s5, 4  ;;  %s606_s6 = int_to_ptr.vmem [resolvable:$false] %s605_s6 }
  0x15   : > { %p608_p1 = scmp.lt.s32.totalorder (!%p194_p10), %s368_s14, %s606_s6 }
  0x16   : > { %s766_s29 = scalar_select %p236_p11, %s671_s18, 1 }
  0x18   : > { %s540_s30 = smul.u32 20, %s766_s29 }
  0x1a   : > { %s243_s7 = scalar_lea.vmem %s828_s0, %s540_s30  ;;  %s601_s30 = scalar_lea.vmem %s368_s14, 64 }
  0x1b   : > { %v598_v1 = vld [vmem:[%s243_s7] sm:$0xff]   ;;  %v599_v2 = vld [vmem:[%s243_s7 + $0x8] sm:$0xff]   ;;  %v600_v3 = vld [vmem:[%s243_s7 + $0x10] ss:$0 sps:$4 sm:$0x33]   ;;  %p602_p12 = scmp.ne.s32.totalorder %s368_s14, %s601_s30  ;;  %s607_s7 = scalar_lea.vmem %s606_s6, 128 }
  0x1c   : > { %531 = vmatpush3.bf16.msra.mxu0 %v598_v1  ;;  %v286_v4 = vsel %vm284_vm1, %v600_v3, 0  ;;  %p609_p2 = scmp.lt.s32.totalorder %s607_s7, %s601_s30 }
  0x1d   : > { %532 = vmatprep.subr.bf16.mxu0 %v681_v0  ;;  %p603_p13 = pnand %p602_p12, %p749_p4 }
  0x1e   : > { %p610_p3 = por %p609_p2, %p608_p1 }
  0x1f   : > { %p604_p0 = pneg %p603_p13 }
  0x20   : > { %533 = vmatpush3.bf16.msra.mxu0 %v599_v2 }
  0x21   : > { %534 = vmatprep.subr.bf16.mxu0 %v681_v0  ;;  %p611_p5 = pnand %p610_p3, %p604_p0 }
  0x24   : > { %535 = vmatpush3.bf16.msra.mxu0 %v286_v4 }
  0x27   : > { %537 = vmatmul.mubr.msk.bf16.vlgmr.msra.gmra.mrb[0].mxu0 %vm280_vm2, %v259_v5 }
  0xfa   : > { %v322_v6 = vpop.f32.mrb[0].mxu0 }
  0xfb   : > { %v328_v7 = vpack.c.bf16 %v322_v6, %v322_v6  ;;  %330 = vadd.xlane.f32.xlu0 %v322_v6  ;;  %v538_v8 = vpop.f32.mrb[1].mxu0  ;;  %v334_v11 = vmul.f32 %v322_v6, %v322_v6 }
  0xfc   : > { %v325_v9 = vpop.f32.mrb[2].mxu0 }
  0xfd   : > { %v539_v10 = vpop.f32.mrb[3].mxu0  ;;  %329 = vst [vmem:[%s217_s12] sm:$0xf] %v328_v7 }
  0xff   : > { %335 = vadd.xlane.f32.xlu0 %v334_v11 }
 0x100   : > { %614 = shalt.err (!%p611_p5)
}
 0x101   : > { %s615_s18 = scalar_lea.hbm %s780_s24, 64  ;;  %s619_s10 = scalar_lea.hbm %s830_s2, 128 }
 0x102   : > { %p616_p6 = scmp.ne.s32.totalorder %s780_s24, %s615_s18  ;;  %p620_p10 = scmp.lt.u32.totalorder %s780_s24, %s830_s2 }
 0x103   : > { %p621_p11 = scmp.lt.u32.totalorder %s619_s10, %s615_s18  ;;  %p623_p13 = scmp.lt.u32.totalorder %s615_s18, %s780_s24 }
 0x104   : > { %p617_p7 = pnand %p616_p6, %p749_p4 }
 0x105   : > { %p622_p12 = por %p621_p11, %p620_p10 }
 0x106   : > { %p618_p9 = pneg %p617_p7 }
 0x107   : > { %p624_p0 = por %p623_p13, %p622_p12 }
 0x109   : > { %p625_p1 = pnand %p624_p0, %p618_p9 }
 0x10b   : > { %628 = shalt.err (!%p625_p1)
}
 0x10c   : > { %541 = dma.vmem_to_hbm [thread:$0]  (%p749_p4), %s368_s14, 64, %s780_s24, %s339_s26   ;;  %vm332_vm3 = vcmask 7168  }
 0x10d   : > { %s516_s13 = sshll.u32 %s766_s29, 3 }
 0x10e   : > { %s250_s30 = scalar_lea.vmem %s831_s3, %s516_s13  ;;  %s257_s7 = scalar_lea.vmem %s832_s4, %s516_s13 }
 0x188   : > { %v331_v12 = vpop.xlane.xlu0 %330 }
 0x189   : > { %333 = vst.msk [vmem:[%s250_s30] sm:$0xff] %vm332_vm3, %v331_v12 }
 0x18c   : > { %v336_v13 = vpop.xlane.xlu0 %335 }
 0x18d   : > { %337 = vst.msk [vmem:[%s257_s7] sm:$0xff] %vm332_vm3, %v336_v13 }
 0x18e PF: > { %p547_p2 = scmp.ge.s32.totalorder %s679_s20, 2  ;;  %s385_s25 = sand.u32 1, %s659_s15  }
 0x18f   : > { %s386_s29 = scalar_lea.sflag [#allocation3], %s385_s25 }
 0x190   : > { %p544_p4 = pnand %p547_p2, %p756_p8 }
 0x192   : > { %654 = dma.done.wait (!%p544_p4), %s386_s29, 64  }
 0x193   : > { %656 = vsyncadd (!%p544_p4), %s386_s29, 4294967232  ;;  %s18_s20 = sadd.s32 1, %s679_s20   ;;  %s835_s15 = smov %s663_s16 }
 0x194   : > { %p15_p3 = scmp.ge.s32.totalorder %s18_s20, 4   ;;  %s836_s16 = smov %s667_s17 }
 0x195   : > { %s837_s17 = smov %s762_s28  ;;  %s838_s18 = smov %s675_s19 }
 0x196   : > { %s839_s19 = smov %s841_s23  ;;  %17 = sbr.rel (!%p15_p3) target bundleno = 4 (0x4), region = 87 }
 0x19d   :  { %411 = vsyncpa [#allocation3], 1 }
 0x19e   :  { %413 = vsyncpa [#allocation3 + $0x1], 1 }

</bundles_post_ra>
